<compile_context>
chip_gen: v7x
topology: tpu7x:2x2x1
jax: 0.10.0
libtpu: 0.0.40
codegen_flags: <defaults>
</compile_context>

<pallas_src>
import functools

import jax
import jax.numpy as jnp
from jax.experimental import pallas as pl
from jax.experimental.pallas import tpu as pltpu

VMEM_LIMIT = 32 * 1024 * 1024  # safe on v5e/v6e/v7x scoped VMEM; tiles below stay well inside


def _pick_tile(dim, max_tile, align):
    """Largest legal tile <= max_tile: multiple of `align` dividing dim, else full dim."""
    if dim <= max_tile:
        return dim
    t = (max_tile // align) * align
    while t >= align and dim % t != 0:
        t -= align
    return t if t >= align and dim % t == 0 else dim


# ----------------------------- tiled linear ---------------------------------

def _linear_kernel(x_ref, w_ref, b_ref, o_ref, acc_ref, *, activation):
    k = pl.program_id(2)

    @pl.when(k == 0)
    def _():
        acc_ref[...] = jnp.zeros_like(acc_ref)

    acc_ref[...] += jnp.dot(x_ref[...], w_ref[...],
                            preferred_element_type=jnp.float32)

    @pl.when(k == pl.num_programs(2) - 1)
    def _():
        y = acc_ref[...] + b_ref[...]          # bias only in finalize (f32)
        if activation == "gelu":
            # TODO(synk): tanh-approximate GELU; exact erf GELU differs slightly.
            c = jnp.float32(0.7978845608028654)  # sqrt(2/pi)
            y = 0.5 * y * (1.0 + jnp.tanh(c * (y + 0.044715 * y * y * y)))
        elif activation == "tanh":
            y = jnp.tanh(y)
        o_ref[...] = y.astype(o_ref.dtype)


def linear(x, w, b, activation="none", out_dtype=jnp.bfloat16,
           tm=1024, tn=512, tk=512):
    """y = act(x @ w + b); x:(M,K) bf16, w:(K,N) bf16, b:(N,) f32."""
    M, K = x.shape
    N = w.shape[1]
    tm = _pick_tile(M, tm, 8)
    tn = _pick_tile(N, tn, 128)
    tk = _pick_tile(K, tk, 128)
    flops = 2 * M * N * K
    bytes_accessed = (x.size * x.dtype.itemsize + w.size * w.dtype.itemsize
                      + b.size * b.dtype.itemsize
                      + M * N * jnp.dtype(out_dtype).itemsize)
    return pl.pallas_call(
        functools.partial(_linear_kernel, activation=activation),
        out_shape=jax.ShapeDtypeStruct((M, N), out_dtype),
        grid=(M // tm, N // tn, K // tk),
        in_specs=[
            pl.BlockSpec((tm, tk), lambda i, j, k: (i, k)),
            pl.BlockSpec((tk, tn), lambda i, j, k: (k, j)),
            pl.BlockSpec((1, tn), lambda i, j, k: (0, j)),
        ],
        out_specs=pl.BlockSpec((tm, tn), lambda i, j, k: (i, j)),
        scratch_shapes=[pltpu.VMEM((tm, tn), jnp.float32)],
        compiler_params=pltpu.CompilerParams(
            dimension_semantics=("parallel", "parallel", "arbitrary"),
            vmem_limit_bytes=VMEM_LIMIT),
        cost_estimate=pl.CostEstimate(
            flops=flops,
            transcendentals=M * N if activation in ("gelu", "tanh") else 0,
            bytes_accessed=bytes_accessed),
    )(x, w, b.reshape(1, N))


# ------------------ fused linear + residual-add + LayerNorm ------------------

def _linear_add_ln_kernel(x_ref, w_ref, b_ref, r_ref, g_ref, bb_ref,
                          o_ref, acc_ref, *, eps):
    k = pl.program_id(1)

    @pl.when(k == 0)
    def _():
        acc_ref[...] = jnp.zeros_like(acc_ref)

    acc_ref[...] += jnp.dot(x_ref[...], w_ref[...],
                            preferred_element_type=jnp.float32)

    @pl.when(k == pl.num_programs(1) - 1)
    def _():
        y = acc_ref[...] + b_ref[...] + r_ref[...].astype(jnp.float32)
        mean = jnp.mean(y, axis=-1, keepdims=True)
        yc = y - mean
        var = jnp.mean(yc * yc, axis=-1, keepdims=True)
        inv = jax.lax.rsqrt(var + eps)
        o_ref[...] = (yc * inv * g_ref[...] + bb_ref[...]).astype(o_ref.dtype)


def linear_add_ln(x, w, b, res, gamma, beta, out_dtype=jnp.bfloat16,
                  tm=1024, tk=512, eps=1e-12):
    """LayerNorm(x @ w + b + res); N (=hidden) kept whole on the lane axis."""
    M, K = x.shape
    N = w.shape[1]
    tm = _pick_tile(M, tm, 8)
    tk = _pick_tile(K, tk, 128)
    flops = 2 * M * N * K
    bytes_accessed = (x.size * x.dtype.itemsize + w.size * w.dtype.itemsize
                      + res.size * res.dtype.itemsize
                      + M * N * jnp.dtype(out_dtype).itemsize)
    return pl.pallas_call(
        functools.partial(_linear_add_ln_kernel, eps=eps),
        out_shape=jax.ShapeDtypeStruct((M, N), out_dtype),
        grid=(M // tm, K // tk),
        in_specs=[
            pl.BlockSpec((tm, tk), lambda i, k: (i, k)),
            pl.BlockSpec((tk, N), lambda i, k: (k, 0)),
            pl.BlockSpec((1, N), lambda i, k: (0, 0)),
            pl.BlockSpec((tm, N), lambda i, k: (i, 0)),
            pl.BlockSpec((1, N), lambda i, k: (0, 0)),
            pl.BlockSpec((1, N), lambda i, k: (0, 0)),
        ],
        out_specs=pl.BlockSpec((tm, N), lambda i, k: (i, 0)),
        scratch_shapes=[pltpu.VMEM((tm, N), jnp.float32)],
        compiler_params=pltpu.CompilerParams(
            dimension_semantics=("parallel", "arbitrary"),
            vmem_limit_bytes=VMEM_LIMIT),
        cost_estimate=pl.CostEstimate(flops=flops, transcendentals=0,
                                      bytes_accessed=bytes_accessed),
    )(x, w, b.reshape(1, N), res, gamma.reshape(1, N), beta.reshape(1, N))


# --------------------------- LayerNorm-only ----------------------------------

def _layernorm_kernel(x_ref, g_ref, b_ref, o_ref, *, eps):
    x = x_ref[...].astype(jnp.float32)
    mean = jnp.mean(x, axis=-1, keepdims=True)
    xc = x - mean
    var = jnp.mean(xc * xc, axis=-1, keepdims=True)
    inv = jax.lax.rsqrt(var + eps)
    o_ref[...] = (xc * inv * g_ref[...] + b_ref[...]).astype(o_ref.dtype)


def layernorm(x, gamma, beta, out_dtype=jnp.bfloat16, tm=512, eps=1e-12):
    M, H = x.shape
    tm = _pick_tile(M, tm, 8)
    return pl.pallas_call(
        functools.partial(_layernorm_kernel, eps=eps),
        out_shape=jax.ShapeDtypeStruct((M, H), out_dtype),
        grid=(M // tm,),
        in_specs=[
            pl.BlockSpec((tm, H), lambda i: (i, 0)),
            pl.BlockSpec((1, H), lambda i: (0, 0)),
            pl.BlockSpec((1, H), lambda i: (0, 0)),
        ],
        out_specs=pl.BlockSpec((tm, H), lambda i: (i, 0)),
        compiler_params=pltpu.CompilerParams(
            dimension_semantics=("parallel",),
            vmem_limit_bytes=VMEM_LIMIT),
    )(x, gamma.reshape(1, H), beta.reshape(1, H))


# ------------------------------ attention ------------------------------------

def _attention_kernel(qkv_ref, m_ref, o_ref, *, heads, head_dim):
    """One batch element: all heads of softmax(QK^T + mask) V.

    qkv_ref: (S, 3H) bf16 (lane-dense), Q already pre-scaled via wqkv fold.
    m_ref:   (1, S)  f32 additive key mask.
    o_ref:   (S, H)  bf16 context, heads concatenated on the lane axis.
    """
    H = heads * head_dim
    x = qkv_ref[...]                                   # (S, 3H) bf16
    m = m_ref[...]                                     # (1, S) f32
    ctxs = []
    for h in range(heads):                             # static unroll over heads
        lo = h * head_dim
        q = x[:, lo:lo + head_dim]                     # (S, D)
        k = x[:, H + lo:H + lo + head_dim]
        v = x[:, 2 * H + lo:2 * H + lo + head_dim]
        s = jax.lax.dot_general(q, k, (((1,), (1,)), ((), ())),
                                preferred_element_type=jnp.float32)   # (S, S)
        s = s + m                                      # broadcast key mask over rows
        s = s - jnp.max(s, axis=-1, keepdims=True)
        p = jnp.exp(s)                                 # f32 exp (keep accuracy on v5e)
        p = p * pl.reciprocal(jnp.sum(p, axis=-1, keepdims=True), approx=True)
        ctx = jnp.dot(p.astype(v.dtype), v, preferred_element_type=jnp.float32)
        ctxs.append(ctx)
    # single lane-dense (S, H) store (no masked partial stores)
    o_ref[...] = jnp.concatenate(ctxs, axis=-1).astype(o_ref.dtype)


def attention(qkv3d, add_mask, heads, head_dim):
    """qkv3d: (B, S, 3H) bf16; add_mask: (B, 1, S) additive f32. -> (B, S, H) bf16."""
    # TODO(synk): flash-style kv-tiled online softmax for S >= 512 (v7x VMEM).
    B, S, threeH = qkv3d.shape
    H = threeH // 3
    flops = 4 * B * heads * S * S * head_dim
    bytes_accessed = (qkv3d.size * qkv3d.dtype.itemsize
                      + add_mask.size * add_mask.dtype.itemsize
                      + B * S * H * 2)
    return pl.pallas_call(
        functools.partial(_attention_kernel, heads=heads, head_dim=head_dim),
        out_shape=jax.ShapeDtypeStruct((B, S, H), jnp.bfloat16),
        grid=(B,),
        in_specs=[
            pl.BlockSpec((None, S, threeH), lambda b: (b, 0, 0)),
            pl.BlockSpec((None, 1, S), lambda b: (b, 0, 0)),
        ],
        out_specs=pl.BlockSpec((None, S, H), lambda b: (b, 0, 0)),
        compiler_params=pltpu.CompilerParams(
            dimension_semantics=("parallel",),
            vmem_limit_bytes=VMEM_LIMIT),
        cost_estimate=pl.CostEstimate(flops=flops,
                                      transcendentals=B * heads * S * S,
                                      bytes_accessed=bytes_accessed),
    )(qkv3d, add_mask)


# --------------------------- fused pooler + fc1 -------------------------------

def _pooler_fc1_kernel(x_ref, pw_ref, pb_ref, fw_ref, fb_ref, o_ref):
    pooled = jnp.tanh(jnp.dot(x_ref[...], pw_ref[...],
                              preferred_element_type=jnp.float32) + pb_ref[...])
    # dropout(p=0.1) is identity at inference.
    # TODO(synk): training-mode stochastic dropout not implemented.
    logits = jnp.dot(pooled, fw_ref[...],
                     preferred_element_type=jnp.float32) + fb_ref[...]   # f32 head
    o_ref[...] = logits.astype(o_ref.dtype)


def pooler_fc1(cls, pw, pb, fw_pad, fb_pad):
    B, H = cls.shape
    Np = fw_pad.shape[1]                 # lane-dense padded class dim (multiple of 128)
    return pl.pallas_call(
        _pooler_fc1_kernel,
        out_shape=jax.ShapeDtypeStruct((B, Np), jnp.float32),
        grid=(1,),
        in_specs=[
            pl.BlockSpec((B, H), lambda i: (0, 0)),
            pl.BlockSpec((H, H), lambda i: (0, 0)),
            pl.BlockSpec((1, H), lambda i: (0, 0)),
            pl.BlockSpec((H, Np), lambda i: (0, 0)),
            pl.BlockSpec((1, Np), lambda i: (0, 0)),
        ],
        out_specs=pl.BlockSpec((B, Np), lambda i: (0, 0)),
        compiler_params=pltpu.CompilerParams(vmem_limit_bytes=VMEM_LIMIT),
    )(cls, pw, pb.reshape(1, H), fw_pad, fb_pad.reshape(1, Np))


# ------------------------- parameter initialization -------------------------

def init_params(key, *, vocab, max_pos, hidden, heads, inter, layers, n_cls1):
    std = 0.02
    hd = hidden // heads
    qscale = 1.0 / float(hd) ** 0.5
    ks = iter(jax.random.split(key, 8 + layers * 8))

    def nrm_f32(shape):
        return std * jax.random.normal(next(ks), shape, dtype=jnp.float32)

    def nrm(shape):
        return nrm_f32(shape).astype(jnp.bfloat16)

    n_pad = ((n_cls1 + 127) // 128) * 128
    fc1_w = nrm_f32((hidden, n_cls1))                       # classifier head kept f32
    fc1_w_pad = jnp.zeros((hidden, n_pad), jnp.float32).at[:, :n_cls1].set(fc1_w)

    p = {
        "word_emb": nrm_f32((vocab, hidden)),
        "pos_emb": nrm_f32((max_pos, hidden)),
        "tok_emb": nrm_f32((2, hidden)),
        "emb_ln_g": jnp.ones((hidden,), jnp.float32),
        "emb_ln_b": jnp.zeros((hidden,), jnp.float32),
        "pooler_w": nrm((hidden, hidden)),
        "pooler_b": jnp.zeros((hidden,), jnp.float32),
        "fc1_w_pad": fc1_w_pad,
        "fc1_b_pad": jnp.zeros((n_pad,), jnp.float32),
        "n_cls1": n_cls1,
        "layers": [],
    }
    for _ in range(layers):
        # fused Q|K|V with the 1/sqrt(head_dim) scale folded into the Q columns (exact)
        wqkv = nrm_f32((hidden, 3 * hidden)).at[:, :hidden].multiply(qscale)
        p["layers"].append({
            "wqkv": wqkv.astype(jnp.bfloat16),
            "bqkv": jnp.zeros((3 * hidden,), jnp.float32),
            "wo": nrm((hidden, hidden)),
            "bo": jnp.zeros((hidden,), jnp.float32),
            "ln1_g": jnp.ones((hidden,), jnp.float32),
            "ln1_b": jnp.zeros((hidden,), jnp.float32),
            "w1": nrm((hidden, inter)),
            "b1": jnp.zeros((inter,), jnp.float32),
            "w2": nrm((inter, hidden)),
            "b2": jnp.zeros((hidden,), jnp.float32),
            "ln2_g": jnp.ones((hidden,), jnp.float32),
            "ln2_b": jnp.zeros((hidden,), jnp.float32),
        })
    return p


# ------------------------------ forward pass --------------------------------

def bert_classifier_forward(params, input_ids, attention_mask, *, heads):
    B, S = input_ids.shape
    H = params["word_emb"].shape[1]
    hd = H // heads
    M = B * S

    # embeddings (gather = glue); token_type_ids default to 0 as in the PyTorch call
    x = (params["word_emb"][input_ids]
         + params["pos_emb"][:S][None, :, :]
         + params["tok_emb"][0][None, None, :])                 # (B,S,H) f32
    x2d = layernorm(x.reshape(M, H), params["emb_ln_g"], params["emb_ln_b"])  # bf16

    # additive key mask, kept compact as (B, 1, S); broadcast happens in-kernel
    add_mask = ((1.0 - attention_mask.astype(jnp.float32)) * -10000.0)[:, None, :]

    for lyr in params["layers"]:
        # fused QKV projection: one (M,H)@(H,3H) GEMM; Q pre-scaled via weight fold
        qkv = linear(x2d, lyr["wqkv"], lyr["bqkv"], out_dtype=jnp.bfloat16)   # (M, 3H)

        # no head split/merge transposes: (M,3H)->(B,S,3H) and (B,S,H)->(M,H)
        # are pure reshapes; head slicing happens on the lane axis in-kernel.
        ctx = attention(qkv.reshape(B, S, 3 * H), add_mask, heads, hd)        # (B,S,H)

        # fused: out-projection + residual + LayerNorm
        x2d = linear_add_ln(ctx.reshape(M, H), lyr["wo"], lyr["bo"], x2d,
                            lyr["ln1_g"], lyr["ln1_b"])

        # FFN: gelu matmul, then fused second matmul + residual + LayerNorm
        h = linear(x2d, lyr["w1"], lyr["b1"], activation="gelu",
                   out_dtype=jnp.bfloat16)
        x2d = linear_add_ln(h, lyr["w2"], lyr["b2"], x2d,
                            lyr["ln2_g"], lyr["ln2_b"])

    # pooler (Linear+tanh on [CLS]) + dropout(eval)=identity + fc1 (f32 head), fused,
    # with a lane-dense padded class dim sliced back in glue
    cls = x2d.reshape(B, S, H)[:, 0, :]                                       # (B, H)
    logits_pad = pooler_fc1(cls, params["pooler_w"], params["pooler_b"],
                            params["fc1_w_pad"], params["fc1_b_pad"])          # (B, 128)
    return logits_pad[:, :params["n_cls1"]]


# ---------------------------------- main -------------------------------------

if __name__ == "__main__":
    BATCH, SEQ = 2, 8
    HIDDEN, HEADS, INTER, LAYERS = 32, 4, 64, 2
    VOCAB, MAX_POS = 50, 16
    NUM_CLASSES1 = 5

    key = jax.random.PRNGKey(0)
    k_params, k_ids = jax.random.split(key)

    params = init_params(k_params, vocab=VOCAB, max_pos=MAX_POS, hidden=HIDDEN,
                         heads=HEADS, inter=INTER, layers=LAYERS,
                         n_cls1=NUM_CLASSES1)

    input_ids = jax.random.randint(k_ids, (BATCH, SEQ), 0, VOCAB, dtype=jnp.int32)
    attention_mask = jnp.array([[1, 1, 1, 1, 1, 1, 1, 1],
                                [1, 1, 1, 1, 1, 0, 0, 0]], dtype=jnp.int32)

    logits1 = bert_classifier_forward(params, input_ids, attention_mask, heads=HEADS)
    logits1 = jax.block_until_ready(logits1)

    assert logits1.shape == (BATCH, NUM_CLASSES1)
    assert logits1.dtype == jnp.float32
    assert bool(jnp.all(jnp.isfinite(logits1)))
    print("KERNEL_OK")
</pallas_src>

<mosaic_0001>
module attributes {stable_mosaic.version = 11 : i64} {
  func.func @_layernorm_kernel(%arg0: i32, %arg1: memref<16x32xf32, #tpu.memory_space<vmem>>, %arg2: memref<1x32xf32, #tpu.memory_space<vmem>>, %arg3: memref<1x32xf32, #tpu.memory_space<vmem>>, %arg4: memref<16x32xbf16, #tpu.memory_space<vmem>>) attributes {dimension_semantics = [#tpu.dimension_semantics<parallel>], iteration_bounds = array<i64: 1>, scalar_prefetch = 0 : i64, scratch_operands = 0 : i64, tpu.core_type = #tpu.core_type<tc>, window_params = [{transform_indices = @transform_0, window_bounds = array<i64: 16, 32>}, {pipeline_mode = #tpu.pipeline_mode<synchronous>, transform_indices = @transform_1, window_bounds = array<i64: 1, 32>}, {pipeline_mode = #tpu.pipeline_mode<synchronous>, transform_indices = @transform_2, window_bounds = array<i64: 1, 32>}, {transform_indices = @transform_3, window_bounds = array<i64: 16, 32>}]} {
    %c0 = arith.constant 0 : index
    %c0_0 = arith.constant 0 : index
    %0 = vector.load %arg1[%c0, %c0_0] : memref<16x32xf32, #tpu.memory_space<vmem>>, vector<16x32xf32>
    %cst = arith.constant dense<0.000000e+00> : vector<16xf32>
    %1 = vector.multi_reduction <add>, %0, %cst [1] : vector<16x32xf32> to vector<16xf32>
    %2 = vector.shape_cast %1 : vector<16xf32> to vector<16x1xf32>
    %cst_1 = arith.constant 3.200000e+01 : f32
    %3 = vector.broadcast %cst_1 : f32 to vector<16x1xf32>
    %4 = arith.divf %2, %3 : vector<16x1xf32>
    %5 = vector.broadcast %4 : vector<16x1xf32> to vector<16x32xf32>
    %6 = arith.subf %0, %5 : vector<16x32xf32>
    %7 = arith.mulf %6, %6 : vector<16x32xf32>
    %cst_2 = arith.constant dense<0.000000e+00> : vector<16xf32>
    %8 = vector.multi_reduction <add>, %7, %cst_2 [1] : vector<16x32xf32> to vector<16xf32>
    %9 = vector.shape_cast %8 : vector<16xf32> to vector<16x1xf32>
    %cst_3 = arith.constant 3.200000e+01 : f32
    %10 = vector.broadcast %cst_3 : f32 to vector<16x1xf32>
    %11 = arith.divf %9, %10 : vector<16x1xf32>
    %cst_4 = arith.constant 9.99999996E-13 : f32
    %12 = vector.broadcast %cst_4 : f32 to vector<16x1xf32>
    %13 = arith.addf %11, %12 : vector<16x1xf32>
    %14 = math.rsqrt %13 : vector<16x1xf32>
    %15 = vector.broadcast %14 : vector<16x1xf32> to vector<16x32xf32>
    %16 = arith.mulf %6, %15 : vector<16x32xf32>
    %c0_5 = arith.constant 0 : index
    %c0_6 = arith.constant 0 : index
    %17 = vector.load %arg2[%c0_5, %c0_6] : memref<1x32xf32, #tpu.memory_space<vmem>>, vector<1x32xf32>
    %18 = vector.broadcast %17 : vector<1x32xf32> to vector<16x32xf32>
    %19 = arith.mulf %16, %18 : vector<16x32xf32>
    %c0_7 = arith.constant 0 : index
    %c0_8 = arith.constant 0 : index
    %20 = vector.load %arg3[%c0_7, %c0_8] : memref<1x32xf32, #tpu.memory_space<vmem>>, vector<1x32xf32>
    %21 = vector.broadcast %20 : vector<1x32xf32> to vector<16x32xf32>
    %22 = arith.addf %19, %21 : vector<16x32xf32>
    %23 = arith.truncf %22 : vector<16x32xf32> to vector<16x32xbf16>
    %c0_9 = arith.constant 0 : index
    %c0_10 = arith.constant 0 : index
    %24 = vector.load %arg4[%c0_9, %c0_10] : memref<16x32xbf16, #tpu.memory_space<vmem>>, vector<16x32xbf16>
    tpu.vector_store %arg4[%c0_9, %c0_10], %23 {strides = array<i32>} : memref<16x32xbf16, #tpu.memory_space<vmem>>, vector<16x32xbf16>,
    return
  }
  func.func @transform_0(%arg0: i32) -> (i32, i32) {
    %c0_i32 = arith.constant 0 : i32
    %c0_i32_0 = arith.constant 0 : i32
    return %arg0, %c0_i32 : i32, i32
  }
  func.func @transform_1(%arg0: i32) -> (i32, i32) {
    %c0_i32 = arith.constant 0 : i32
    %c0_i32_0 = arith.constant 0 : i32
    %c0_i32_1 = arith.constant 0 : i32
    return %c0_i32, %c0_i32_0 : i32, i32
  }
  func.func @transform_2(%arg0: i32) -> (i32, i32) {
    %c0_i32 = arith.constant 0 : i32
    %c0_i32_0 = arith.constant 0 : i32
    %c0_i32_1 = arith.constant 0 : i32
    return %c0_i32, %c0_i32_0 : i32, i32
  }
  func.func @transform_3(%arg0: i32) -> (i32, i32) {
    %c0_i32 = arith.constant 0 : i32
    %c0_i32_0 = arith.constant 0 : i32
    return %arg0, %c0_i32 : i32, i32
  }
}

</mosaic_0001>

<bundles_post_ra>
// kernel: tpu_custom_call.1
= control target key start
LH: loop header
LB: loop body
LE: loop exit
PB: predicated region body
PF: predicated region fallthrough
CT: control target
= control target key end

     0   :  { %8 = vsyncpa [#allocation3], 0  ;;  %s229_s0 = inlined_call_operand.hbm [shape: f32[16,32], index: 0, kind: input, shape index: {}]   ;;  %s230_s1 = inlined_call_operand.vmem [shape: f32[1,32], index: 1, kind: input, shape index: {}]   ;;  %s231_s2 = inlined_call_operand.vmem [shape: f32[1,32], index: 2, kind: input, shape index: {}]   ;;  %s232_s3 = inlined_call_operand.hbm [shape: bf16[16,32], index: 3, kind: output, shape index: {}]  }
   0x1   :  { %9 = vsyncpa [#allocation4], 0  ;;  %s169_s12 = smov [#allocation2]   ;;  %s121_s16 = scalar_lea.hbm %s229_s0, 256 }
   0x2   :  { %s15_s13 = sshll.u32 %s169_s12, 4  ;;  %p122_p0 = scmp.ne.s32.totalorder %s229_s0, %s121_s16  ;;  %s16_s13 = int_to_ptr.vmem [resolvable:$true] %s15_s13 }
   0x3   :  { %p125_p1 = scmp.lt.u32.totalorder %s121_s16, %s229_s0 }
   0x5   :  { %p127_p2 = pnand %p125_p1, %p122_p0 }
   0x7   :  { %130 = shalt.err (!%p127_p2)
}
   0x8   :  { %s131_s21 = scalar_lea.vmem %s16_s13, 256  ;;  %p136_p4 = scmp.lt.s32.totalorder %s16_s13, %s16_s13 }
   0x9   :  { %p132_p3 = scmp.ne.s32.totalorder %s16_s13, %s131_s21  ;;  %p137_p5 = scmp.lt.s32.totalorder %s131_s21, %s131_s21 }
   0xb   :  { %p138_p6 = por %p137_p5, %p136_p4 }
   0xd   :  { %p139_p7 = pnand %p138_p6, %p132_p3 }
   0xf   :  { %142 = shalt.err (!%p139_p7)
}
  0x10   :  { %s170_s22 = smov 128   ;;  %s171_s23 = smov 8  }
  0x11   :  { %21 = dma.hbm_to_vmem [thread:$0]  %s229_s0, 256, %s16_s13, [#allocation3], %s170_s22, %s170_s22, %s171_s23  }
  0x12   :  { %165 = dma.done.wait [#allocation3], 256  }
  0x13   :  { %166 = vsyncadd [#allocation3], 4294967040  ;;  %vm31_vm0 = vcmask 261120   ;;  %v29_v0 = vld [vmem:[#allocation2] sm:$0xff]  ;;  %v30_v1 = vld [vmem:[#allocation2 + $0x8] sm:$0xff]  ;;  %vm85_vm1 = vcmask 257024  }
  0x14   :  { %v32_v2 = vsel %vm31_vm0, %v29_v0, 0.0  ;;  %v35_v3 = vsel %vm31_vm0, %v30_v1, 0.0  ;;  %v105_v21 = vld [vmem:[%s230_s1] ss:$0 sm:$0xff]  ;;  %s172_s29 = smov [#allocation5]  }
  0x15   :  { %33 = vadd.xlane.f32.xlu0 %v32_v2  ;;  %v106_v23 = vld [vmem:[%s231_s2] ss:$0 sm:$0xff]  ;;  %s93_s30 = sshll.u32 %s172_s29, 4  ;;  %s94_s30 = int_to_ptr.vmem [resolvable:$true] %s93_s30 }
  0x16   :  { %s143_s1 = scalar_lea.vmem %s94_s30, 128  ;;  %p148_p9 = scmp.lt.s32.totalorder %s94_s30, %s94_s30 }
  0x17   :  { %p144_p8 = scmp.ne.s32.totalorder %s94_s30, %s143_s1  ;;  %p149_p10 = scmp.lt.s32.totalorder %s143_s1, %s143_s1 }
  0x19   :  { %36 = vadd.xlane.f32.xlu0 %v35_v3  ;;  %p150_p11 = por %p149_p10, %p148_p9 }
  0x1b   :  { %p151_p12 = pnand %p150_p11, %p144_p8 }
  0xa2   :  { %v34_v4 = vpop.xlane.xlu0 %33 }
  0xa3   :  { %v39_v5 = vmul.f32 0.03125, %v34_v4 }
  0xa5   :  { %v41_v6 = vsub.f32 %v29_v0, %v39_v5 }
  0xa6   :  { %v37_v7 = vpop.xlane.xlu0 %36 }
  0xa7   :  { %v40_v8 = vmul.f32 0.03125, %v37_v7  ;;  %v43_v9 = vmul.f32 %v41_v6, %v41_v6 }
  0xa9   :  { %v42_v10 = vsub.f32 %v30_v1, %v40_v8  ;;  %v45_v11 = vsel %vm31_vm0, %v43_v9, 0.0 }
  0xaa   :  { %46 = vadd.xlane.f32.xlu1 %v45_v11 }
  0xab   :  { %v44_v12 = vmul.f32 %v42_v10, %v42_v10 }
  0xad   :  { %v48_v13 = vsel %vm31_vm0, %v44_v12, 0.0 }
  0xae   :  { %49 = vadd.xlane.f32.xlu1 %v48_v13 }
 0x137   :  { %v47_v14 = vpop.xlane.xlu1 %46 }
 0x138   :  { %v51_v15 = vmul.f32 0.03125, %v47_v14 }
 0x13a   :  { %v53_v16 = vadd.f32 1e-12, %v51_v15 }
 0x13b   :  { %v50_v17 = vpop.xlane.xlu1 %49 }
 0x13c   :  { %117 = vrsqrt.f32 %v53_v16  ;;  %v52_v18 = vmul.f32 0.03125, %v50_v17 }
 0x13e   :  { %v54_v19 = vadd.f32 1e-12, %v52_v18 }
 0x140   :  { %119 = vrsqrt.f32 %v54_v19 }
 0x146   :  { %v118_v20 = vpop.eup %117 }
 0x147   :  { %v57_v22 = vmul.f32 %v118_v20, %v41_v6 }
 0x149   :  { %v66_v24 = vmul.f32 %v105_v21, %v57_v22 }
 0x14a   :  { %v120_v25 = vpop.eup %119 }
 0x14b   :  { %v58_v26 = vmul.f32 %v120_v25, %v42_v10  ;;  %v75_v27 = vadd.f32 %v106_v23, %v66_v24 }
 0x14d   :  { %v67_v28 = vmul.f32 %v105_v21, %v58_v26  ;;  %v109_v29 = vpack.c.bf16 %v75_v27, %v75_v27 }
 0x14f   :  { %v76_v30 = vadd.f32 %v106_v23, %v67_v28  ;;  %86 = vst.msk [vmem:[#allocation5] sm:$0xf] %vm85_vm1, %v109_v29 }
 0x151   :  { %v110_v31 = vpack.c.bf16 %v76_v30, %v76_v30 }
 0x153   :  { %87 = vst.msk [vmem:[#allocation5 + $0x4] sm:$0xf] %vm85_vm1, %v110_v31 }
 0x154   :  { %154 = shalt.err (!%p151_p12)
}
 0x155   :  { %s155_s5 = scalar_lea.hbm %s232_s3, 128 }
 0x156   :  { %p156_p13 = scmp.ne.s32.totalorder %s232_s3, %s155_s5  ;;  %p159_p0 = scmp.lt.u32.totalorder %s155_s5, %s232_s3 }
 0x158   :  { %p161_p1 = pnand %p159_p0, %p156_p13 }
 0x15a   :  { %164 = shalt.err (!%p161_p1)
}
 0x15b   :  { %s173_s10 = smov 64   ;;  %s174_s11 = smov 4  }
 0x15c   :  { %99 = dma.vmem_to_hbm [thread:$0]  %s94_s30, 128, %s232_s3, [#allocation4], %s173_s10, %s173_s10, %s174_s11  }
 0x15d   :  { %167 = dma.done.wait [#allocation4], 128  }
 0x15e   :  { %168 = vsyncadd [#allocation4], 4294967168 }
 0x15f   :  { %103 = vsyncpa [#allocation3], 1 }
 0x160   :  { %104 = vsyncpa [#allocation4], 1 }

</bundles_post_ra>
